<compile_context>
chip_gen: v7x
topology: tpu7x:2x2x1
jax: 0.10.0
libtpu: 0.0.40
codegen_flags: <defaults>
</compile_context>

<pallas_src>
import math

import jax
import jax.numpy as jnp
from jax.experimental import pallas as pl
from jax.experimental.pallas import tpu as pltpu


def _make_concat_kernel(concat_sizes):
    """Builds a kernel copying each input block into its static slice of the
    output block along the (middle) concat axis."""
    offsets = []
    off = 0
    for c in concat_sizes:
        offsets.append(off)
        off += c

    def kernel(*refs):
        in_refs = refs[:-1]
        o_ref = refs[-1]
        for r, c, o in zip(in_refs, concat_sizes, offsets):
            # static channel slice -> plain vector stores, no gather/scatter
            o_ref[:, o:o + c, :] = r[...]

    return kernel


def concat_pallas(xs, dimension=1):
    """Concatenate a list/tuple of arrays along `dimension` (torch.cat semantics)."""
    xs = [jnp.asarray(x) for x in xs]
    if len(xs) == 1:
        return xs[0]

    ndim = xs[0].ndim
    d = dimension % ndim
    out_dtype = jnp.result_type(*[x.dtype for x in xs])
    xs = [x.astype(out_dtype) for x in xs]

    shape0 = xs[0].shape
    outer = math.prod(shape0[:d])
    inner = math.prod(shape0[d + 1:])
    concat_sizes = [int(x.shape[d]) for x in xs]
    c_total = sum(concat_sizes)

    # 3-D views: (outer, concat_i, inner). Last dim (inner) is the lane axis.
    x3ds = [x.reshape(outer, c, inner) for x, c in zip(xs, concat_sizes)]

    # Spatial (lane-axis) tiling: keep tiles lane-dense multiples of 128 when
    # possible; otherwise use the full inner extent (allowed by Mosaic).
    MAX_TL = 2048
    if inner % 128 == 0 and inner > MAX_TL:
        tl = MAX_TL
    else:
        tl = inner
    n_spatial = pl.cdiv(inner, tl)

    grid = (outer, n_spatial)

    in_specs = [
        pl.BlockSpec((1, c, tl), lambda o, s: (o, 0, s))
        for c in concat_sizes
    ]
    out_spec = pl.BlockSpec((1, c_total, tl), lambda o, s: (o, 0, s))

    total_bytes = sum(x.size * x.dtype.itemsize for x in x3ds)

    out3d = pl.pallas_call(
        _make_concat_kernel(tuple(concat_sizes)),
        out_shape=jax.ShapeDtypeStruct((outer, c_total, inner), out_dtype),
        grid=grid,
        in_specs=in_specs,
        out_specs=out_spec,
        compiler_params=pltpu.CompilerParams(
            dimension_semantics=("parallel", "parallel")),
        cost_estimate=pl.CostEstimate(
            flops=0, transcendentals=0, bytes_accessed=2 * total_bytes),
    )(*x3ds)

    out_shape = shape0[:d] + (c_total,) + shape0[d + 1:]
    return out3d.reshape(out_shape)


if __name__ == "__main__":
    key = jax.random.PRNGKey(0)
    k1, k2, k3, k4, k5 = jax.random.split(key, 5)

    # Default Concat usage: channel concat (dim=1) on NCHW feature maps.
    x1 = jax.random.normal(k1, (2, 4, 16, 16), dtype=jnp.float32)
    x2 = jax.random.normal(k2, (2, 8, 16, 16), dtype=jnp.float32)
    x3 = jax.random.normal(k3, (2, 4, 16, 16), dtype=jnp.float32)

    y = concat_pallas([x1, x2, x3], dimension=1)
    y = jax.block_until_ready(y)
    y_ref = jnp.concatenate([x1, x2, x3], axis=1)
    assert y.shape == (2, 16, 16, 16)
    assert jnp.array_equal(y, y_ref)

    # Generality check: concat along a spatial dimension (dim=2).
    a = jax.random.normal(k4, (2, 4, 8, 16), dtype=jnp.float32)
    b = jax.random.normal(k5, (2, 4, 16, 16), dtype=jnp.float32)
    z = concat_pallas([a, b], dimension=2)
    z = jax.block_until_ready(z)
    z_ref = jnp.concatenate([a, b], axis=2)
    assert z.shape == (2, 4, 24, 16)
    assert jnp.array_equal(z, z_ref)

    print("KERNEL_OK")
</pallas_src>

<mosaic_0001>
module attributes {stable_mosaic.version = 11 : i64} {
  func.func @kernel(%arg0: i32, %arg1: i32, %arg2: memref<1x4x256xf32, #tpu.memory_space<vmem>>, %arg3: memref<1x8x256xf32, #tpu.memory_space<vmem>>, %arg4: memref<1x4x256xf32, #tpu.memory_space<vmem>>, %arg5: memref<1x16x256xf32, #tpu.memory_space<vmem>>) attributes {dimension_semantics = [#tpu.dimension_semantics<parallel>, #tpu.dimension_semantics<parallel>], iteration_bounds = array<i64: 2, 1>, scalar_prefetch = 0 : i64, scratch_operands = 0 : i64, tpu.core_type = #tpu.core_type<tc>, window_params = [{transform_indices = @transform_0, window_bounds = array<i64: 1, 4, 256>}, {transform_indices = @transform_1, window_bounds = array<i64: 1, 8, 256>}, {transform_indices = @transform_2, window_bounds = array<i64: 1, 4, 256>}, {transform_indices = @transform_3, window_bounds = array<i64: 1, 16, 256>}]} {
    %c0 = arith.constant 0 : index
    %c0_0 = arith.constant 0 : index
    %c0_1 = arith.constant 0 : index
    %0 = vector.load %arg2[%c0, %c0_0, %c0_1] : memref<1x4x256xf32, #tpu.memory_space<vmem>>, vector<1x4x256xf32>
    %c0_2 = arith.constant 0 : index
    %c0_3 = arith.constant 0 : index
    %c0_4 = arith.constant 0 : index
    %1 = vector.load %arg5[%c0_2, %c0_3, %c0_4] : memref<1x16x256xf32, #tpu.memory_space<vmem>>, vector<1x4x256xf32>
    tpu.vector_store %arg5[%c0_2, %c0_3, %c0_4], %0 {strides = array<i32>} : memref<1x16x256xf32, #tpu.memory_space<vmem>>, vector<1x4x256xf32>,
    %c0_5 = arith.constant 0 : index
    %c0_6 = arith.constant 0 : index
    %c0_7 = arith.constant 0 : index
    %2 = vector.load %arg3[%c0_5, %c0_6, %c0_7] : memref<1x8x256xf32, #tpu.memory_space<vmem>>, vector<1x8x256xf32>
    %c0_8 = arith.constant 0 : index
    %c4 = arith.constant 4 : index
    %c0_9 = arith.constant 0 : index
    %3 = vector.load %arg5[%c0_8, %c4, %c0_9] : memref<1x16x256xf32, #tpu.memory_space<vmem>>, vector<1x8x256xf32>
    tpu.vector_store %arg5[%c0_8, %c4, %c0_9], %2 {strides = array<i32>} : memref<1x16x256xf32, #tpu.memory_space<vmem>>, vector<1x8x256xf32>,
    %c0_10 = arith.constant 0 : index
    %c0_11 = arith.constant 0 : index
    %c0_12 = arith.constant 0 : index
    %4 = vector.load %arg4[%c0_10, %c0_11, %c0_12] : memref<1x4x256xf32, #tpu.memory_space<vmem>>, vector<1x4x256xf32>
    %c0_13 = arith.constant 0 : index
    %c12 = arith.constant 12 : index
    %c0_14 = arith.constant 0 : index
    %5 = vector.load %arg5[%c0_13, %c12, %c0_14] : memref<1x16x256xf32, #tpu.memory_space<vmem>>, vector<1x4x256xf32>
    tpu.vector_store %arg5[%c0_13, %c12, %c0_14], %4 {strides = array<i32>} : memref<1x16x256xf32, #tpu.memory_space<vmem>>, vector<1x4x256xf32>,
    return
  }
  func.func @transform_0(%arg0: i32, %arg1: i32) -> (i32, i32, i32) {
    %c0_i32 = arith.constant 0 : i32
    %c0_i32_0 = arith.constant 0 : i32
    return %arg0, %c0_i32, %arg1 : i32, i32, i32
  }
  func.func @transform_1(%arg0: i32, %arg1: i32) -> (i32, i32, i32) {
    %c0_i32 = arith.constant 0 : i32
    %c0_i32_0 = arith.constant 0 : i32
    return %arg0, %c0_i32, %arg1 : i32, i32, i32
  }
  func.func @transform_2(%arg0: i32, %arg1: i32) -> (i32, i32, i32) {
    %c0_i32 = arith.constant 0 : i32
    %c0_i32_0 = arith.constant 0 : i32
    return %arg0, %c0_i32, %arg1 : i32, i32, i32
  }
  func.func @transform_3(%arg0: i32, %arg1: i32) -> (i32, i32, i32) {
    %c0_i32 = arith.constant 0 : i32
    %c0_i32_0 = arith.constant 0 : i32
    return %arg0, %c0_i32, %arg1 : i32, i32, i32
  }
}

</mosaic_0001>

<bundles_post_ra>
// kernel: tpu_custom_call.1
= control target key start
LH: loop header
LB: loop body
LE: loop exit
PB: predicated region body
PF: predicated region fallthrough
CT: control target
= control target key end

     0   :  { %s1031_s0 = inlined_call_operand.hbm [shape: f32[2,4,256], index: 0, kind: input, shape index: {}]   ;;  %s1032_s1 = inlined_call_operand.hbm [shape: f32[2,8,256], index: 1, kind: input, shape index: {}]   ;;  %s1033_s2 = inlined_call_operand.hbm [shape: f32[2,4,256], index: 2, kind: input, shape index: {}]   ;;  %s1034_s3 = inlined_call_operand.hbm [shape: f32[2,16,256], index: 3, kind: output, shape index: {}]  }
   0x1   :  { %1041 = sst [smem:[#allocation15_spill]] %s1032_s1 }
   0x2   :  { %8 = vsyncpa [#allocation3], 0 }
   0x3   :  { %10 = vsyncpa [#allocation3 + $0x1], 0 }
   0x4   :  { %11 = vsyncpa [#allocation6], 0 }
   0x5   :  { %13 = vsyncpa [#allocation6 + $0x1], 0 }
   0x6   :  { %14 = vsyncpa [#allocation4], 0 }
   0x7   :  { %16 = vsyncpa [#allocation4 + $0x1], 0  ;;  %s773_s12 = smov 0   ;;  %s775_s13 = smov 0  }
   0x8   :  { %s777_s14 = smov 0   ;;  %s779_s15 = smov 0  }
   0x9   :  { %s781_s16 = smov 0   ;;  %s783_s17 = smov 0  }
   0xa LB: > { %1042 = sst [smem:[#allocation12_spill]] %s741_s16  ;;  %s804_s18 = sadd.s32 4294967295, %s745_s17   ;;  %s745_s17 = sphi %s783_s17, %s22_s17   ;;  %s741_s16 = sphi %s781_s16, %s1064_s16   ;;  %s737_s15 = sphi %s779_s15, %s1063_s15   ;;  %s733_s14 = sphi %s777_s14, %s1067_s14   ;;  %s729_s13 = sphi %s775_s13, %s1066_s13   ;;  %s725_s12 = sphi %s773_s12, %s1065_s12  }
   0xb   : > { %s467_s19 = sadd.s32 4294967294, %s745_s17   ;;  %s34_s20 = sadd.s32 1, %s741_s16 }
   0xc   : > { %s43_s21 = sadd.s32 1, %s733_s14  ;;  %p36_p0 = scmp.ge.s32.totalorder %s34_s20, 2 }
   0xd   : > { %p50_p1 = scmp.ne.s32.totalorder %s733_s14, %s729_s13  ;;  %p51_p2 = scmp.eq.s32.totalorder %s745_s17, 0 }
   0xe   : > { %p56_p3 = scmp.ne.s32.totalorder %s729_s13, %s725_s12  ;;  %s1069_s20 = smov (%p36_p0, %s34_s20), 0 }
   0xf   : > { %1043 = sst [smem:[#allocation13_spill]] %s1069_s20  ;;  %p816_p4 = por %p51_p2, %p50_p1 }
  0x10   : > { %p57_p5 = scmp.eq.s32.totalorder %s804_s18, 0  ;;  %s38_s23 = ssub.s32 %s741_s16, %s1069_s20 }
  0x11   : > { %p138_p6 = scmp.eq.s32.totalorder %s804_s18, 1  ;;  %p41_p7 = scmp.eq.s32.totalorder %s38_s23, 0 }
  0x12   : > { %p824_p8 = por %p57_p5, %p56_p3  ;;  %p144_p10 = scmp.eq.s32.totalorder %s467_s19, 1 }
  0x13   : > { %p828_p9 = por %p138_p6, %p50_p1  ;;  %p515_p13 = scmp.lt.s32.totalorder %s745_s17, 2 }
  0x14   : > { %s1045_s24 = scalar_select %p824_p8, 1, 0 }
  0x15   : > { %s1046_s25 = scalar_select %p828_p9, 1, 0 }
  0x16   : > { %s833_s26 = scalar_select %p41_p7, %s733_s14, %s43_s21  }
  0x17   : > { %p835_p11 = por %p144_p10, %p56_p3  ;;  %s842_s28 = sand.u32 1, %s733_s14  }
  0x18   : > { %1047 = sst [smem:[#allocation14_spill]] %s833_s26  ;;  %s185_s29 = sand.u32 1, %s745_s17  }
  0x19   : > { %s1048_s27 = scalar_select %p835_p11, 1, 0 }
  0x1a   : > { %s473_s30 = sshll.u32 %s842_s28, 4  ;;  %p848_p0 = pnand %p515_p13, %p816_p4 }
  0x1b   : > { %s490_s5 = sshll.u32 %s741_s16, 8  ;;  %s1050_s1 = sld [smem:[#allocation15_spill]] }
  0x1c   : > { %s1049_s4 = scalar_select %p848_p0, 1, 0 }
  0x1d   : > { %s189_s9 = scalar_lea.vmem [#allocation5], %s473_s30  ;;  %s862_s11 = scalar_lea.sflag [#allocation6], %s185_s29 }
  0x1e   : > { %s199_s10 = sshll.u32 %s189_s9, 4  ;;  %p868_p4 = pneg %p848_p0  ;;  %s859_s10 = int_to_ptr.vmem [resolvable:$true] %s199_s10 }
  0x21   : > { %s856_s8 = scalar_lea.hbm %s1050_s1, %s490_s5  ;;  %s574_s30 = scalar_lea.hbm %s1050_s1, 512 }
  0x22   : > { %s569_s19 = scalar_lea.hbm %s856_s8, 256  ;;  %p575_p7 = scmp.lt.u32.totalorder %s856_s8, %s1050_s1 }
  0x23   : > { %p570_p3 = scmp.ne.s32.totalorder %s856_s8, %s569_s19  ;;  %p576_p10 = scmp.lt.u32.totalorder %s574_s30, %s569_s19 }
  0x24   : > { %p578_p12 = scmp.lt.u32.totalorder %s569_s19, %s856_s8 }
  0x25   : > { %p572_p5 = pnand %p868_p4, %p570_p3  ;;  %p577_p13 = por %p576_p10, %p575_p7 }
  0x27   : > { %p573_p6 = pneg %p572_p5  ;;  %p579_p1 = por %p578_p12, %p577_p13 }
  0x29   : > { %p580_p2 = pnand %p579_p1, %p573_p6 }
  0x2b   : > { %583 = shalt.err (!%p580_p2)
}
  0x2c   : > { %s584_s29 = scalar_lea.vmem %s859_s10, 256  ;;  %s747_s7 = smov [#allocation5]  }
  0x2d   : > { %p585_p3 = scmp.ne.s32.totalorder %s859_s10, %s584_s29  ;;  %s589_s9 = sshll.u32 %s747_s7, 4  ;;  %s590_s9 = int_to_ptr.vmem [resolvable:$false] %s589_s9 }
  0x2e   : > { %s591_s22 = scalar_lea.vmem %s590_s9, 512  ;;  %p592_p9 = scmp.lt.s32.totalorder %s859_s10, %s590_s9 }
  0x2f   : > { %p587_p5 = pnand %p585_p3, %p868_p4  ;;  %p593_p8 = scmp.lt.s32.totalorder %s591_s22, %s584_s29 }
  0x31   : > { %p588_p11 = pneg %p587_p5  ;;  %p594_p7 = por %p593_p8, %p592_p9 }
  0x33   : > { %p595_p10 = pnand %p594_p7, %p588_p11 }
  0x35   : > { %598 = shalt.err (!%p595_p10)
}
  0x36   : > { %507 = dma.hbm_to_vmem [thread:$0]  (!%p848_p0), %s856_s8, 256, %s859_s10, %s862_s11  }
  0x37   : > { %p1052_p12 = scmp.lt.s32.totalorder %s745_s17, 3  ;;  %p1053_p1 = scmp.ge.s32.totalorder %s745_s17, 1 }
  0x38   : > { %s1039_s23 = sshll.u32 %s842_s28, 3  ;;  %s489_s30 = sshll.u32 %s741_s16, 7 }
  0x39   : > { %p896_p2 = pnand %p1053_p1, %p1052_p12  ;;  %s905_s29 = scalar_lea.hbm %s1031_s0, %s489_s30 }
  0x3a   : > { %s168_s7 = scalar_lea.vmem [#allocation2], %s1039_s23  ;;  %s914_s22 = scalar_lea.hbm %s1033_s2, %s489_s30 }
  0x3b   : > { %s1054_s19 = scalar_select %p896_p2, 1, 0 }
  0x3c   : > { %s178_s8 = sshll.u32 %s168_s7, 4  ;;  %s165_s1 = scalar_lea.sflag [#allocation3], %s842_s28  ;;  %s909_s8 = int_to_ptr.vmem [resolvable:$true] %s178_s8 }
  0x3d   : > { %s599_s20 = scalar_lea.hbm %s905_s29, 128  ;;  %s604_s16 = scalar_lea.hbm %s1031_s0, 256 }
  0x3e   : > { %p600_p8 = scmp.ne.s32.totalorder %s905_s29, %s599_s20  ;;  %p605_p6 = scmp.lt.u32.totalorder %s905_s29, %s1031_s0 }
  0x3f   : > { %p606_p13 = scmp.lt.u32.totalorder %s604_s16, %s599_s20  ;;  %p608_p5 = scmp.lt.u32.totalorder %s599_s20, %s905_s29 }
  0x40   : > { %p602_p9 = pnand %p600_p8, %p868_p4 }
  0x41   : > { %p607_p3 = por %p606_p13, %p605_p6 }
  0x42   : > { %p603_p11 = pneg %p602_p9 }
  0x43   : > { %p609_p7 = por %p608_p5, %p607_p3 }
  0x45   : > { %p610_p10 = pnand %p609_p7, %p603_p11 }
  0x47   : > { %613 = shalt.err (!%p610_p10)
}
  0x48   : > { %s614_s30 = scalar_lea.vmem %s909_s8, 128  ;;  %s748_s7 = smov [#allocation2]  }
  0x49   : > { %p615_p12 = scmp.ne.s32.totalorder %s909_s8, %s614_s30  ;;  %s619_s10 = sshll.u32 %s748_s7, 4  ;;  %s620_s10 = int_to_ptr.vmem [resolvable:$false] %s619_s10 }
  0x4a   : > { %s621_s26 = scalar_lea.vmem %s620_s10, 256  ;;  %p622_p9 = scmp.lt.s32.totalorder %s909_s8, %s620_s10 }
  0x4b   : > { %p617_p1 = pnand %p615_p12, %p868_p4  ;;  %p623_p2 = scmp.lt.s32.totalorder %s621_s26, %s614_s30 }
  0x4d   : > { %p618_p8 = pneg %p617_p1  ;;  %p624_p6 = por %p623_p2, %p622_p9 }
  0x4f   : > { %p625_p13 = pnand %p624_p6, %p618_p8 }
  0x51   : > { %628 = shalt.err (!%p625_p13)
}
  0x52   : > { %504 = dma.hbm_to_vmem [thread:$0]  (!%p848_p0), %s905_s29, 128, %s909_s8, %s165_s1  }
  0x53   : > { %s1055_s16 = sshll.u32 %s842_s28, 3  ;;  %s629_s9 = scalar_lea.hbm %s914_s22, 128 }
  0x54   : > { %s210_s20 = scalar_lea.vmem [#allocation7], %s1055_s16  ;;  %p630_p11 = scmp.ne.s32.totalorder %s914_s22, %s629_s9 }
  0x55   : > { %s220_s23 = sshll.u32 %s210_s20, 4  ;;  %s634_s30 = scalar_lea.hbm %s1033_s2, 256  ;;  %s221_s23 = int_to_ptr.vmem [resolvable:$true] %s220_s23 }
  0x56   : > { %p632_p2 = pnand %p630_p11, %p868_p4  ;;  %p635_p5 = scmp.lt.u32.totalorder %s914_s22, %s1033_s2 }
  0x57   : > { %p636_p7 = scmp.lt.u32.totalorder %s634_s30, %s629_s9  ;;  %p638_p12 = scmp.lt.u32.totalorder %s629_s9, %s914_s22 }
  0x58   : > { %p633_p3 = pneg %p632_p2 }
  0x59   : > { %p637_p10 = por %p636_p7, %p635_p5 }
  0x5b   : > { %p639_p1 = por %p638_p12, %p637_p10 }
  0x5d   : > { %p640_p8 = pnand %p639_p1, %p633_p3 }
  0x5f   : > { %643 = shalt.err (!%p640_p8)
}
  0x60   : > { %s644_s1 = scalar_lea.vmem %s221_s23, 128  ;;  %s749_s28 = smov [#allocation7]  }
  0x61   : > { %p645_p9 = scmp.ne.s32.totalorder %s221_s23, %s644_s1  ;;  %s649_s29 = sshll.u32 %s749_s28, 4  ;;  %s650_s29 = int_to_ptr.vmem [resolvable:$false] %s649_s29 }
  0x62   : > { %s651_s8 = scalar_lea.vmem %s650_s29, 256  ;;  %p652_p11 = scmp.lt.s32.totalorder %s221_s23, %s650_s29 }
  0x63   : > { %p647_p6 = pnand %p645_p9, %p868_p4  ;;  %p653_p2 = scmp.lt.s32.totalorder %s651_s8, %s644_s1 }
  0x65   : > { %p648_p13 = pneg %p647_p6  ;;  %p654_p0 = por %p653_p2, %p652_p11 }
  0x67   : > { %p655_p5 = pnand %p654_p0, %p648_p13 }
  0x69   : > { %658 = shalt.err (!%p655_p5)
}
  0x6a   : > { %p1056_p7 = scmp.ne.s32.totalorder %s1049_s4, 0  ;;  %p1057_p3 = scmp.ne.s32.totalorder %s1054_s19, 0 }
  0x6b   : > { %s961_s21 = sand.u32 (!%p1057_p3), 1, %s729_s13   ;;  %p1058_p4 = scmp.ne.s32.totalorder (!%p1057_p3), %s1045_s24, 0 }
  0x6c   : > { %510 = dma.hbm_to_vmem [thread:$0]  (!%p1056_p7), %s914_s22, 128, %s221_s23, %s862_s11  }
  0x6d   : > { %229 = sbr.rel (%p1057_p3) target bundleno = 148 (0x94), region = 32  ;;  %s480_s26 = sshll.u32 (!%p1057_p3), %s961_s21, 3 }
  0x6e   : > { %s232_s16 = scalar_lea.sflag (!%p1057_p3), [#allocation3], %s961_s21  ;;  %s235_s20 = scalar_lea.vmem (!%p1057_p3), [#allocation2], %s480_s26 }
  0x74   : > { %712 = dma.done.wait (%p1058_p4), %s232_s16, 128  }
  0x75   : > { %714 = vsyncadd (%p1058_p4), %s232_s16, 4294967168  ;;  %s240_s4 = sand.u32 1, %s804_s18   ;;  %s481_s11 = sshll.u32 %s961_s21, 4 }
  0x76   : > { %s241_s19 = scalar_lea.sflag [#allocation6], %s240_s4  ;;  %s244_s22 = scalar_lea.vmem [#allocation5], %s481_s11 }
  0x77   : > { %716 = dma.done.wait (%p1058_p4), %s241_s19, 384  }
  0x78   : > { %718 = vsyncadd (%p1058_p4), %s241_s19, 4294966912  ;;  %s483_s23 = sshll.u32 %s961_s21, 5  ;;  %s492_s6 = sshll.u32 %s737_s15, 9  ;;  %v290_v0 = vld [vmem:[%s235_s20] sm:$0xff]  ;;  %v296_v1 = vld [vmem:[%s244_s22] sm:$0xff] }
  0x79   : > { %s285_s9 = scalar_lea.vmem [#allocation8], %s483_s23  ;;  %v297_v2 = vld [vmem:[%s244_s22 + $0x8] sm:$0xff]  ;;  %v292_v3 = vcombine.high %v290_v0, %v290_v0  ;;  %v300_v4 = vrot.slane %v296_v1, 4  ;;  %s253_s18 = scalar_lea.vmem [#allocation7], %s480_s26 }
  0x7a   : > { %s330_s5 = sshll.u32 %s285_s9, 4  ;;  %294 = vst [vmem:[%s285_s9] sm:$0xf] %v290_v0  ;;  %v301_v5 = vrot.slane %v297_v2, 4  ;;  %v308_v6 = vld [vmem:[%s253_s18] sm:$0xff]  ;;  %s982_s7 = scalar_lea.hbm %s1034_s3, %s492_s6  ;;  %s977_s5 = int_to_ptr.vmem [resolvable:$true] %s330_s5 }
  0x7b   : > { %v310_v7 = vcombine.low %v308_v6, %v308_v6  ;;  %313 = vst [vmem:[%s285_s9 + $0x18] sm:$0xf0] %v308_v6  ;;  %295 = vst [vmem:[%s285_s9 + $0x8] sm:$0xf] %v292_v3  ;;  %s315_s15 = scalar_lea.sflag [#allocation4], %s961_s21  ;;  %s659_s10 = scalar_lea.vmem %s977_s5, 512 }
  0x7c   : > { %304 = vst [vmem:[%s285_s9 + $0x10] ss:$-12 sps:$4 sm:$0xff] %v300_v4   ;;  %305 = vst [vmem:[%s285_s9 + $0x18] ss:$-12 sps:$4 sm:$0xff] %v301_v5   ;;  %p660_p0 = scmp.ne.s32.totalorder %s977_s5, %s659_s10  ;;  %p1059_p10 = scmp.ne.s32.totalorder %s1046_s25, 0 }
  0x7d   : > { %312 = vst [vmem:[%s285_s9 + $0x10] sm:$0xf0] %v310_v7  ;;  %s750_s1 = smov [#allocation8]  }
  0x7e   : > { %p661_p12 = pnand %p660_p0, %p1059_p10  ;;  %s663_s28 = sshll.u32 %s750_s1, 4  ;;  %s664_s28 = int_to_ptr.vmem [resolvable:$false] %s663_s28 }
  0x7f   : > { %s665_s29 = scalar_lea.vmem %s664_s28, 1024  ;;  %p666_p8 = scmp.lt.s32.totalorder %s977_s5, %s664_s28 }
  0x80   : > { %p662_p1 = pneg %p661_p12  ;;  %p667_p9 = scmp.lt.s32.totalorder %s665_s29, %s659_s10 }
  0x82   : > { %p668_p6 = por %p667_p9, %p666_p8 }
  0x84   : > { %p669_p13 = pnand %p668_p6, %p662_p1 }
  0x86   : > { %672 = shalt.err (!%p669_p13)
}
  0x87   : > { %s673_s8 = scalar_lea.hbm %s982_s7, 512  ;;  %s677_s20 = scalar_lea.hbm %s1034_s3, 1024 }
  0x88   : > { %p674_p11 = scmp.ne.s32.totalorder %s982_s7, %s673_s8  ;;  %p678_p7 = scmp.lt.u32.totalorder %s982_s7, %s1034_s3 }
  0x89   : > { %p679_p3 = scmp.lt.u32.totalorder %s677_s20, %s673_s8  ;;  %p681_p0 = scmp.lt.u32.totalorder %s673_s8, %s982_s7 }
  0x8a   : > { %p675_p2 = pnand %p674_p11, %p1059_p10 }
  0x8b   : > { %p680_p4 = por %p679_p3, %p678_p7 }
  0x8c   : > { %p676_p5 = pneg %p675_p2 }
  0x8d   : > { %p682_p12 = por %p681_p0, %p680_p4 }
  0x8f   : > { %p683_p1 = pnand %p682_p12, %p676_p5 }
  0x91   : > { %686 = shalt.err (!%p683_p1)
}
  0x92   : > { %s751_s19 = smov 256   ;;  %s752_s22 = smov 16  }
  0x93   : > { %499 = dma.vmem_to_hbm [thread:$0]  (%p1059_p10), %s977_s5, 512, %s982_s7, %s315_s15, %s751_s19, %s751_s19, %s752_s22  }
  0x94 PF: > { %s345_s23 = sand.u32 1, %s725_s12   ;;  %p1060_p8 = scmp.ne.s32.totalorder %s1048_s27, 0 }
  0x95   : > { %p1061_p9 = scmp.ge.s32.totalorder %s745_s17, 2  ;;  %s346_s9 = scalar_lea.sflag [#allocation4], %s345_s23 }
  0x97   : > { %p512_p6 = pnand %p1061_p9, %p1060_p8 }
  0x99   : > { %720 = dma.done.wait (!%p512_p6), %s346_s9, 512  }
  0x9a   : > { %722 = vsyncadd (!%p512_p6), %s346_s9, 4294966784  ;;  %s22_s17 = sadd.s32 1, %s745_s17   ;;  %s1062_s6 = sld [smem:[#allocation14_spill]] }
  0x9b   : > { %p19_p13 = scmp.ge.s32.totalorder %s22_s17, 4   ;;  %s1063_s15 = sld [smem:[#allocation12_spill]] }
  0x9c   : > { %s1064_s16 = sld [smem:[#allocation13_spill]]  ;;  %s1065_s12 = smov %s729_s13 }
  0x9d   : > { %s1066_s13 = smov %s733_s14  ;;  %21 = sbr.rel (!%p19_p13) target bundleno = 10 (0xa), region = 101 }
  0xa0   : > { %s1067_s14 = smov %s1062_s6 }
  0xa4   :  { %351 = vsyncpa [#allocation3], 1 }
  0xa5   :  { %353 = vsyncpa [#allocation3 + $0x1], 1 }
  0xa6   :  { %354 = vsyncpa [#allocation6], 1 }
  0xa7   :  { %356 = vsyncpa [#allocation6 + $0x1], 1 }
  0xa8   :  { %357 = vsyncpa [#allocation4], 1 }
  0xa9   :  { %359 = vsyncpa [#allocation4 + $0x1], 1 }

</bundles_post_ra>
